<compile_context>
chip_gen: v7x
topology: tpu7x:2x2x1
jax: 0.10.0
libtpu: 0.0.40
codegen_flags: <defaults>
</compile_context>

<pallas_src>
import functools

import numpy as np

import jax
import jax.numpy as jnp
from jax import lax
from jax.experimental import pallas as pl
from jax.experimental.pallas import tpu as pltpu


# Polyphase tap table for ConvTranspose2d(K=5, stride=2, pad=2, out_pad=1),
# expressed against the input zero-padded by 1 and the flipped correlation
# weight w[k] = W_t[..., 4 - k]:
#   y[2*m + phase] = sum_taps xpad[m + offset] @ w[wrow]
# Entries: (offset, wrow).  Same table applies to rows and columns.
_PHASE_TAPS = {
    0: ((0, 0), (1, 2), (2, 4)),   # even output rows/cols: 3 taps
    1: ((1, 1), (2, 3)),           # odd output rows/cols:  2 taps
}


def _upsample_fused_kernel(x_ref, b1_ref, tb_ref, b2_ref, cb_ref, o_ref,
                           xrows_ref, mid_ref):
    """Fused ConvTranspose2d(5,2,2,1) + Conv2d(3,1,1) for one batch image.

    x_ref    : (1, H, W*C)        f32   input image rows, channels minor
    b1_ref   : (5, W*C, 2W*C)     bf16  banded transposed-conv weights (per ky)
    tb_ref   : (1, 2W*C)          f32   transposed-conv bias, tiled over cols
    b2_ref   : (3, 2W*C, 2W*C)    f32   banded 3x3-conv weights (per dy)
    cb_ref   : (1, 2W*C)          f32   3x3-conv bias, tiled over cols
    o_ref    : (1, 2, H, 2W*C)    f32   output, row-phase planar, lane-dense
    xrows_ref: (H+2, W*C)         bf16  scratch: input rows + zero halo rows
    mid_ref  : (2, H+2, 2W*C)     f32   scratch: transposed-conv output,
                                        row-phase planar + zero halo rows
    """
    H = x_ref.shape[1]

    # One-time zeroing of the halo rows (scratch persists across grid steps;
    # interiors are fully overwritten every step, halos are never written).
    @pl.when(pl.program_id(0) == 0)
    def _zero_halos():
        xrows_ref[...] = jnp.zeros_like(xrows_ref)
        mid_ref[...] = jnp.zeros_like(mid_ref)

    # Fill input rows; the f32 -> bf16 cast happens here (no wrapper HBM pass).
    xrows_ref[1:H + 1, :] = x_ref[0].astype(xrows_ref.dtype)

    # ---- stage 1: polyphase ConvTranspose2d as banded matmuls --------------
    # Output row 2m+ry = sum over row taps (oy, wy) of
    #   xrows[m+oy, :] @ B1[wy]            (column taps live inside B1's band)
    tb = tb_ref[...]                                    # (1, 2W*C) f32
    for ry in (0, 1):
        acc = None
        for oy, wy in _PHASE_TAPS[ry]:
            part = jnp.dot(xrows_ref[oy:oy + H, :], b1_ref[wy],
                           preferred_element_type=jnp.float32)
            acc = part if acc is None else acc + part
        mid_ref[ry, 1:H + 1, :] = acc + tb              # f32 intermediate

    # ---- stage 2: 3x3 Conv2d as banded matmuls on the row-phase planes -----
    # Output row 2m'+ry' = sum over dy of mid[(ry'+dy)%2, m'+(ry'+dy)//2] @ B2[dy]
    cb = cb_ref[...]                                    # (1, 2W*C) f32
    for ryp in (0, 1):
        acc = None
        for dy in (-1, 0, 1):
            sy = (ryp + dy) % 2
            sh = (ryp + dy) // 2                        # floor division
            part = jnp.dot(mid_ref[sy, 1 + sh:1 + sh + H, :], b2_ref[dy + 1],
                           preferred_element_type=jnp.float32)
            acc = part if acc is None else acc + part
        o_ref[0, ryp] = (acc + cb).astype(o_ref.dtype)  # (H, 2W*C) lane-dense


def _pack_weights(params, W):
    """Pre-pack banded weights + tiled biases (all column structure folded in)."""
    C = params["t_b"].shape[0]

    # ConvTranspose2d weight (Cin, Cout, 5, 5) -> flipped correlation, (ky,kx,Ci,Co)
    w_t = jnp.transpose(params["t_w"][:, :, ::-1, ::-1], (2, 3, 0, 1))
    # Conv2d weight (Cout, Cin, 3, 3) -> (ky, kx, Ci, Co)
    w_c = jnp.transpose(params["c_w"], (2, 3, 1, 0))

    # Stage-1 column band: s1[wx, nin, q] = 1 iff input col nin feeds output
    # col q through kernel col wx (polyphase taps incl. output_padding=1).
    s1 = np.zeros((5, W, 2 * W), np.float32)
    for rx, taps in _PHASE_TAPS.items():
        for n in range(W):
            q = 2 * n + rx
            for off, wx in taps:
                nin = n + off - 1
                if 0 <= nin < W:
                    s1[wx, nin, q] = 1.0
    b1 = jnp.einsum("xnq,yxio->yniqo", jnp.asarray(s1), w_t)
    b1 = b1.reshape(5, W * C, 2 * W * C).astype(jnp.bfloat16)

    # Stage-2 column band: s2[dx+1, qin, q] = 1 iff qin == q + dx (in range).
    s2 = np.zeros((3, 2 * W, 2 * W), np.float32)
    for q in range(2 * W):
        for dx in (-1, 0, 1):
            qin = q + dx
            if 0 <= qin < 2 * W:
                s2[dx + 1, qin, q] = 1.0
    b2 = jnp.einsum("xnq,yxio->yniqo", jnp.asarray(s2), w_c)
    b2 = b2.reshape(3, 2 * W * C, 2 * W * C).astype(jnp.float32)

    tb_row = jnp.tile(params["t_b"], 2 * W).reshape(1, 2 * W * C).astype(jnp.float32)
    cb_row = jnp.tile(params["c_b"], 2 * W).reshape(1, 2 * W * C).astype(jnp.float32)
    return b1, tb_row, b2, cb_row


def upsample_forward(x_nchw, temb, cemb, params):
    """Forward of UpSample. temb / cemb are ignored (matches PyTorch forward)."""
    del temb, cemb
    N, C, H, W = x_nchw.shape
    b1, tb_row, b2, cb_row = _pack_weights(params, W)

    # NCHW -> (N, H, W*C): channels minor so each image row is one lane vector.
    x_rows = jnp.transpose(x_nchw, (0, 2, 3, 1)).reshape(N, H, W * C)

    out = pl.pallas_call(
        _upsample_fused_kernel,
        out_shape=jax.ShapeDtypeStruct((N, 2, H, 2 * W * C), x_nchw.dtype),
        grid=(N,),
        in_specs=[
            pl.BlockSpec((1, H, W * C), lambda n: (n, 0, 0)),
            # Grid-invariant weights/biases (constant index_map); small enough
            # that default double-buffering is harmless at these shapes.
            pl.BlockSpec((5, W * C, 2 * W * C), lambda n: (0, 0, 0)),
            pl.BlockSpec((1, 2 * W * C), lambda n: (0, 0)),
            pl.BlockSpec((3, 2 * W * C, 2 * W * C), lambda n: (0, 0, 0)),
            pl.BlockSpec((1, 2 * W * C), lambda n: (0, 0)),
        ],
        out_specs=pl.BlockSpec((1, 2, H, 2 * W * C), lambda n: (n, 0, 0, 0)),
        scratch_shapes=[
            pltpu.VMEM((H + 2, W * C), jnp.bfloat16),        # input rows + halo
            pltpu.VMEM((2, H + 2, 2 * W * C), jnp.float32),  # f32 mid + halo
        ],
        compiler_params=pltpu.CompilerParams(
            # N=2 -> two parallel steps keep both v7x TensorCores busy; add an
            # H-tile grid axis here if N == 1.
            dimension_semantics=("parallel",),
            # 48 MiB: headroom under v7x's 64 MiB physical VMEM, harmless on
            # v5e / v6e (128 MiB).
            vmem_limit_bytes=48 * 1024 * 1024),
    )(x_rows, b1, tb_row, b2, cb_row)

    # (N, 2, H, 2W*C) row-phase planar -> NCHW with ONE XLA transpose.
    out = out.reshape(N, 2, H, 2 * W, C)
    out = jnp.transpose(out, (0, 4, 2, 1, 3)).reshape(N, C, 2 * H, 2 * W)
    return out


def upsample_reference(x_nchw, temb, cemb, params):
    """Pure-XLA f32 HIGHEST reference of the same module (for checking)."""
    del temb, cemb
    x = jnp.transpose(x_nchw, (0, 2, 3, 1))
    wt_conv = jnp.transpose(params["t_w"][:, :, ::-1, ::-1], (2, 3, 0, 1))
    y = lax.conv_general_dilated(
        x, wt_conv, window_strides=(1, 1), padding=((2, 3), (2, 3)),
        lhs_dilation=(2, 2), dimension_numbers=("NHWC", "HWIO", "NHWC"),
        precision=lax.Precision.HIGHEST)
    y = y + params["t_b"].reshape(1, 1, 1, -1)
    wc_conv = jnp.transpose(params["c_w"], (2, 3, 1, 0))
    z = lax.conv_general_dilated(
        y, wc_conv, window_strides=(1, 1), padding=((1, 1), (1, 1)),
        dimension_numbers=("NHWC", "HWIO", "NHWC"),
        precision=lax.Precision.HIGHEST)
    z = z + params["c_b"].reshape(1, 1, 1, -1)
    return jnp.transpose(z, (0, 3, 1, 2))


def init_params(key, in_ch):
    k1, k2, k3, k4 = jax.random.split(key, 4)
    return {
        # ConvTranspose2d weight: (in_ch, out_ch, 5, 5)
        "t_w": jax.random.normal(k1, (in_ch, in_ch, 5, 5), jnp.float32) * 0.1,
        "t_b": jax.random.normal(k2, (in_ch,), jnp.float32) * 0.1,
        # Conv2d weight: (out_ch, in_ch, 3, 3)
        "c_w": jax.random.normal(k3, (in_ch, in_ch, 3, 3), jnp.float32) * 0.1,
        "c_b": jax.random.normal(k4, (in_ch,), jnp.float32) * 0.1,
    }


if __name__ == "__main__":
    key = jax.random.PRNGKey(0)
    kx, kt, kc, kp = jax.random.split(key, 4)

    N, C, H, W = 2, 4, 16, 16
    x = jax.random.normal(kx, (N, C, H, W), jnp.float32)
    temb = jax.random.normal(kt, (N, 32), jnp.float32)   # unused by forward
    cemb = jax.random.normal(kc, (N, 32), jnp.float32)   # unused by forward
    params = init_params(kp, C)

    fwd = jax.jit(functools.partial(upsample_forward, params=params))
    out = jax.block_until_ready(fwd(x, temb, cemb))

    ref = jax.block_until_ready(upsample_reference(x, temb, cemb, params))

    assert out.shape == (N, C, 2 * H, 2 * W), out.shape
    # Stage 1 uses bf16 MXU inputs (f32 accumulation), stage 2 is full f32 on
    # an f32 intermediate -> tight agreement with the f32 HIGHEST reference.
    max_err = float(jnp.max(jnp.abs(out - ref)))
    assert jnp.allclose(out, ref, atol=3e-2, rtol=3e-2), max_err

    print("KERNEL_OK")
</pallas_src>

<mosaic_0001>
module attributes {stable_mosaic.version = 11 : i64} {
  func.func @_upsample_fused_kernel(%arg0: i32, %arg1: memref<1x16x64xf32, #tpu.memory_space<vmem>>, %arg2: memref<5x64x128xbf16, #tpu.memory_space<vmem>>, %arg3: memref<1x128xf32, #tpu.memory_space<vmem>>, %arg4: memref<3x128x128xf32, #tpu.memory_space<vmem>>, %arg5: memref<1x128xf32, #tpu.memory_space<vmem>>, %arg6: memref<1x2x16x128xf32, #tpu.memory_space<vmem>>, %arg7: memref<18x64xbf16, #tpu.memory_space<vmem>>, %arg8: memref<2x18x128xf32, #tpu.memory_space<vmem>>) attributes {dimension_semantics = [#tpu.dimension_semantics<parallel>], iteration_bounds = array<i64: 2>, scalar_prefetch = 0 : i64, scratch_operands = 2 : i64, tpu.core_type = #tpu.core_type<tc>, window_params = [{transform_indices = @transform_0, window_bounds = array<i64: 1, 16, 64>}, {pipeline_mode = #tpu.pipeline_mode<synchronous>, transform_indices = @transform_1, window_bounds = array<i64: 5, 64, 128>}, {pipeline_mode = #tpu.pipeline_mode<synchronous>, transform_indices = @transform_2, window_bounds = array<i64: 1, 128>}, {pipeline_mode = #tpu.pipeline_mode<synchronous>, transform_indices = @transform_3, window_bounds = array<i64: 3, 128, 128>}, {pipeline_mode = #tpu.pipeline_mode<synchronous>, transform_indices = @transform_4, window_bounds = array<i64: 1, 128>}, {transform_indices = @transform_5, window_bounds = array<i64: 1, 2, 16, 128>}]} {
    %c0_i32 = arith.constant 0 : i32
    %0 = arith.cmpi eq, %arg0, %c0_i32 : i32
    %1 = arith.extui %0 : i1 to i32
    %c0_i32_0 = arith.constant 0 : i32
    %2 = arith.cmpi ne, %1, %c0_i32_0 : i32
    scf.if %2 {
      %cst_90 = arith.constant 0.000000e+00 : bf16
      %86 = vector.broadcast %cst_90 : bf16 to vector<18x64xbf16>
      %c0_91 = arith.constant 0 : index
      %c0_92 = arith.constant 0 : index
      %87 = vector.load %arg7[%c0_91, %c0_92] : memref<18x64xbf16, #tpu.memory_space<vmem>>, vector<18x64xbf16>
      tpu.vector_store %arg7[%c0_91, %c0_92], %86 {strides = array<i32>} : memref<18x64xbf16, #tpu.memory_space<vmem>>, vector<18x64xbf16>,
      %cst_93 = arith.constant 0.000000e+00 : f32
      %88 = vector.broadcast %cst_93 : f32 to vector<2x18x128xf32>
      %c0_94 = arith.constant 0 : index
      %c0_95 = arith.constant 0 : index
      %c0_96 = arith.constant 0 : index
      %89 = vector.load %arg8[%c0_94, %c0_95, %c0_96] : memref<2x18x128xf32, #tpu.memory_space<vmem>>, vector<2x18x128xf32>
      tpu.vector_store %arg8[%c0_94, %c0_95, %c0_96], %88 {strides = array<i32>} : memref<2x18x128xf32, #tpu.memory_space<vmem>>, vector<2x18x128xf32>,
    } else {
    }
    %c0 = arith.constant 0 : index
    %c0_1 = arith.constant 0 : index
    %c0_2 = arith.constant 0 : index
    %3 = vector.load %arg1[%c0, %c0_1, %c0_2] : memref<1x16x64xf32, #tpu.memory_space<vmem>>, vector<1x16x64xf32>
    %4 = vector.shape_cast %3 : vector<1x16x64xf32> to vector<16x64xf32>
    %5 = arith.truncf %4 : vector<16x64xf32> to vector<16x64xbf16>
    %c1 = arith.constant 1 : index
    %c0_3 = arith.constant 0 : index
    %6 = vector.load %arg7[%c1, %c0_3] : memref<18x64xbf16, #tpu.memory_space<vmem>>, vector<16x64xbf16>
    tpu.vector_store %arg7[%c1, %c0_3], %5 {strides = array<i32>} : memref<18x64xbf16, #tpu.memory_space<vmem>>, vector<16x64xbf16>,
    %c0_4 = arith.constant 0 : index
    %c0_5 = arith.constant 0 : index
    %7 = vector.load %arg3[%c0_4, %c0_5] : memref<1x128xf32, #tpu.memory_space<vmem>>, vector<1x128xf32>
    %c0_6 = arith.constant 0 : index
    %c0_7 = arith.constant 0 : index
    %8 = vector.load %arg7[%c0_6, %c0_7] : memref<18x64xbf16, #tpu.memory_space<vmem>>, vector<16x64xbf16>
    %c0_8 = arith.constant 0 : index
    %c0_9 = arith.constant 0 : index
    %c0_10 = arith.constant 0 : index
    %9 = vector.load %arg2[%c0_8, %c0_9, %c0_10] : memref<5x64x128xbf16, #tpu.memory_space<vmem>>, vector<1x64x128xbf16>
    %10 = vector.shape_cast %9 : vector<1x64x128xbf16> to vector<64x128xbf16>
    %cst = arith.constant dense<0.000000e+00> : vector<16x128xf32>
    %11 = tpu.matmul %8, %10, %cst {dimension_numbers = #tpu.dot_dimension_numbers<[1], [0], [0], [1], [0, 0, 1, 1], [], []>} : vector<16x64xbf16>, vector<64x128xbf16>, vector<16x128xf32> -> vector<16x128xf32>
    %c1_11 = arith.constant 1 : index
    %c0_12 = arith.constant 0 : index
    %12 = vector.load %arg7[%c1_11, %c0_12] : memref<18x64xbf16, #tpu.memory_space<vmem>>, vector<16x64xbf16>
    %c2 = arith.constant 2 : index
    %c0_13 = arith.constant 0 : index
    %c0_14 = arith.constant 0 : index
    %13 = vector.load %arg2[%c2, %c0_13, %c0_14] : memref<5x64x128xbf16, #tpu.memory_space<vmem>>, vector<1x64x128xbf16>
    %14 = vector.shape_cast %13 : vector<1x64x128xbf16> to vector<64x128xbf16>
    %cst_15 = arith.constant dense<0.000000e+00> : vector<16x128xf32>
    %15 = tpu.matmul %12, %14, %cst_15 {dimension_numbers = #tpu.dot_dimension_numbers<[1], [0], [0], [1], [0, 0, 1, 1], [], []>} : vector<16x64xbf16>, vector<64x128xbf16>, vector<16x128xf32> -> vector<16x128xf32>
    %16 = arith.addf %11, %15 : vector<16x128xf32>
    %c2_16 = arith.constant 2 : index
    %c0_17 = arith.constant 0 : index
    %17 = vector.load %arg7[%c2_16, %c0_17] : memref<18x64xbf16, #tpu.memory_space<vmem>>, vector<16x64xbf16>
    %c4 = arith.constant 4 : index
    %c0_18 = arith.constant 0 : index
    %c0_19 = arith.constant 0 : index
    %18 = vector.load %arg2[%c4, %c0_18, %c0_19] : memref<5x64x128xbf16, #tpu.memory_space<vmem>>, vector<1x64x128xbf16>
    %19 = vector.shape_cast %18 : vector<1x64x128xbf16> to vector<64x128xbf16>
    %cst_20 = arith.constant dense<0.000000e+00> : vector<16x128xf32>
    %20 = tpu.matmul %17, %19, %cst_20 {dimension_numbers = #tpu.dot_dimension_numbers<[1], [0], [0], [1], [0, 0, 1, 1], [], []>} : vector<16x64xbf16>, vector<64x128xbf16>, vector<16x128xf32> -> vector<16x128xf32>
    %21 = arith.addf %16, %20 : vector<16x128xf32>
    %22 = vector.broadcast %7 : vector<1x128xf32> to vector<16x128xf32>
    %23 = arith.addf %21, %22 : vector<16x128xf32>
    %c0_21 = arith.constant 0 : index
    %c1_22 = arith.constant 1 : index
    %c0_23 = arith.constant 0 : index
    %24 = vector.load %arg8[%c0_21, %c1_22, %c0_23] : memref<2x18x128xf32, #tpu.memory_space<vmem>>, vector<1x16x128xf32>
    %25 = vector.shape_cast %24 : vector<1x16x128xf32> to vector<16x128xf32>
    %26 = vector.shape_cast %23 : vector<16x128xf32> to vector<1x16x128xf32>
    tpu.vector_store %arg8[%c0_21, %c1_22, %c0_23], %26 {strides = array<i32>} : memref<2x18x128xf32, #tpu.memory_space<vmem>>, vector<1x16x128xf32>,
    %c1_24 = arith.constant 1 : index
    %c0_25 = arith.constant 0 : index
    %27 = vector.load %arg7[%c1_24, %c0_25] : memref<18x64xbf16, #tpu.memory_space<vmem>>, vector<16x64xbf16>
    %c1_26 = arith.constant 1 : index
    %c0_27 = arith.constant 0 : index
    %c0_28 = arith.constant 0 : index
    %28 = vector.load %arg2[%c1_26, %c0_27, %c0_28] : memref<5x64x128xbf16, #tpu.memory_space<vmem>>, vector<1x64x128xbf16>
    %29 = vector.shape_cast %28 : vector<1x64x128xbf16> to vector<64x128xbf16>
    %cst_29 = arith.constant dense<0.000000e+00> : vector<16x128xf32>
    %30 = tpu.matmul %27, %29, %cst_29 {dimension_numbers = #tpu.dot_dimension_numbers<[1], [0], [0], [1], [0, 0, 1, 1], [], []>} : vector<16x64xbf16>, vector<64x128xbf16>, vector<16x128xf32> -> vector<16x128xf32>
    %c2_30 = arith.constant 2 : index
    %c0_31 = arith.constant 0 : index
    %31 = vector.load %arg7[%c2_30, %c0_31] : memref<18x64xbf16, #tpu.memory_space<vmem>>, vector<16x64xbf16>
    %c3 = arith.constant 3 : index
    %c0_32 = arith.constant 0 : index
    %c0_33 = arith.constant 0 : index
    %32 = vector.load %arg2[%c3, %c0_32, %c0_33] : memref<5x64x128xbf16, #tpu.memory_space<vmem>>, vector<1x64x128xbf16>
    %33 = vector.shape_cast %32 : vector<1x64x128xbf16> to vector<64x128xbf16>
    %cst_34 = arith.constant dense<0.000000e+00> : vector<16x128xf32>
    %34 = tpu.matmul %31, %33, %cst_34 {dimension_numbers = #tpu.dot_dimension_numbers<[1], [0], [0], [1], [0, 0, 1, 1], [], []>} : vector<16x64xbf16>, vector<64x128xbf16>, vector<16x128xf32> -> vector<16x128xf32>
    %35 = arith.addf %30, %34 : vector<16x128xf32>
    %36 = vector.broadcast %7 : vector<1x128xf32> to vector<16x128xf32>
    %37 = arith.addf %35, %36 : vector<16x128xf32>
    %c1_35 = arith.constant 1 : index
    %c1_36 = arith.constant 1 : index
    %c0_37 = arith.constant 0 : index
    %38 = vector.load %arg8[%c1_35, %c1_36, %c0_37] : memref<2x18x128xf32, #tpu.memory_space<vmem>>, vector<1x16x128xf32>
    %39 = vector.shape_cast %38 : vector<1x16x128xf32> to vector<16x128xf32>
    %40 = vector.shape_cast %37 : vector<16x128xf32> to vector<1x16x128xf32>
    tpu.vector_store %arg8[%c1_35, %c1_36, %c0_37], %40 {strides = array<i32>} : memref<2x18x128xf32, #tpu.memory_space<vmem>>, vector<1x16x128xf32>,
    %c0_38 = arith.constant 0 : index
    %c0_39 = arith.constant 0 : index
    %41 = vector.load %arg5[%c0_38, %c0_39] : memref<1x128xf32, #tpu.memory_space<vmem>>, vector<1x128xf32>
    %c1_40 = arith.constant 1 : index
    %c0_41 = arith.constant 0 : index
    %c0_42 = arith.constant 0 : index
    %42 = vector.load %arg8[%c1_40, %c0_41, %c0_42] : memref<2x18x128xf32, #tpu.memory_space<vmem>>, vector<1x16x128xf32>
    %43 = vector.shape_cast %42 : vector<1x16x128xf32> to vector<16x128xf32>
    %c0_43 = arith.constant 0 : index
    %c0_44 = arith.constant 0 : index
    %c0_45 = arith.constant 0 : index
    %44 = vector.load %arg4[%c0_43, %c0_44, %c0_45] : memref<3x128x128xf32, #tpu.memory_space<vmem>>, vector<1x128x128xf32>
    %45 = vector.shape_cast %44 : vector<1x128x128xf32> to vector<128x128xf32>
    %cst_46 = arith.constant dense<0.000000e+00> : vector<16x128xf32>
    %46 = tpu.matmul %43, %45, %cst_46 {dimension_numbers = #tpu.dot_dimension_numbers<[1], [0], [0], [1], [0, 0, 1, 1], [], []>} : vector<16x128xf32>, vector<128x128xf32>, vector<16x128xf32> -> vector<16x128xf32>
    %c0_47 = arith.constant 0 : index
    %c1_48 = arith.constant 1 : index
    %c0_49 = arith.constant 0 : index
    %47 = vector.load %arg8[%c0_47, %c1_48, %c0_49] : memref<2x18x128xf32, #tpu.memory_space<vmem>>, vector<1x16x128xf32>
    %48 = vector.shape_cast %47 : vector<1x16x128xf32> to vector<16x128xf32>
    %c1_50 = arith.constant 1 : index
    %c0_51 = arith.constant 0 : index
    %c0_52 = arith.constant 0 : index
    %49 = vector.load %arg4[%c1_50, %c0_51, %c0_52] : memref<3x128x128xf32, #tpu.memory_space<vmem>>, vector<1x128x128xf32>
    %50 = vector.shape_cast %49 : vector<1x128x128xf32> to vector<128x128xf32>
    %cst_53 = arith.constant dense<0.000000e+00> : vector<16x128xf32>
    %51 = tpu.matmul %48, %50, %cst_53 {dimension_numbers = #tpu.dot_dimension_numbers<[1], [0], [0], [1], [0, 0, 1, 1], [], []>} : vector<16x128xf32>, vector<128x128xf32>, vector<16x128xf32> -> vector<16x128xf32>
    %52 = arith.addf %46, %51 : vector<16x128xf32>
    %c1_54 = arith.constant 1 : index
    %c1_55 = arith.constant 1 : index
    %c0_56 = arith.constant 0 : index
    %53 = vector.load %arg8[%c1_54, %c1_55, %c0_56] : memref<2x18x128xf32, #tpu.memory_space<vmem>>, vector<1x16x128xf32>
    %54 = vector.shape_cast %53 : vector<1x16x128xf32> to vector<16x128xf32>
    %c2_57 = arith.constant 2 : index
    %c0_58 = arith.constant 0 : index
    %c0_59 = arith.constant 0 : index
    %55 = vector.load %arg4[%c2_57, %c0_58, %c0_59] : memref<3x128x128xf32, #tpu.memory_space<vmem>>, vector<1x128x128xf32>
    %56 = vector.shape_cast %55 : vector<1x128x128xf32> to vector<128x128xf32>
    %cst_60 = arith.constant dense<0.000000e+00> : vector<16x128xf32>
    %57 = tpu.matmul %54, %56, %cst_60 {dimension_numbers = #tpu.dot_dimension_numbers<[1], [0], [0], [1], [0, 0, 1, 1], [], []>} : vector<16x128xf32>, vector<128x128xf32>, vector<16x128xf32> -> vector<16x128xf32>
    %58 = arith.addf %52, %57 : vector<16x128xf32>
    %59 = vector.broadcast %41 : vector<1x128xf32> to vector<16x128xf32>
    %60 = arith.addf %58, %59 : vector<16x128xf32>
    %c0_61 = arith.constant 0 : index
    %c0_62 = arith.constant 0 : index
    %c0_63 = arith.constant 0 : index
    %c0_64 = arith.constant 0 : index
    %61 = vector.load %arg6[%c0_61, %c0_62, %c0_63, %c0_64] : memref<1x2x16x128xf32, #tpu.memory_space<vmem>>, vector<1x1x16x128xf32>
    %62 = vector.shape_cast %61 : vector<1x1x16x128xf32> to vector<16x128xf32>
    %63 = vector.shape_cast %60 : vector<16x128xf32> to vector<1x1x16x128xf32>
    tpu.vector_store %arg6[%c0_61, %c0_62, %c0_63, %c0_64], %63 {strides = array<i32>} : memref<1x2x16x128xf32, #tpu.memory_space<vmem>>, vector<1x1x16x128xf32>,
    %c0_65 = arith.constant 0 : index
    %c1_66 = arith.constant 1 : index
    %c0_67 = arith.constant 0 : index
    %64 = vector.load %arg8[%c0_65, %c1_66, %c0_67] : memref<2x18x128xf32, #tpu.memory_space<vmem>>, vector<1x16x128xf32>
    %65 = vector.shape_cast %64 : vector<1x16x128xf32> to vector<16x128xf32>
    %c0_68 = arith.constant 0 : index
    %c0_69 = arith.constant 0 : index
    %c0_70 = arith.constant 0 : index
    %66 = vector.load %arg4[%c0_68, %c0_69, %c0_70] : memref<3x128x128xf32, #tpu.memory_space<vmem>>, vector<1x128x128xf32>
    %67 = vector.shape_cast %66 : vector<1x128x128xf32> to vector<128x128xf32>
    %cst_71 = arith.constant dense<0.000000e+00> : vector<16x128xf32>
    %68 = tpu.matmul %65, %67, %cst_71 {dimension_numbers = #tpu.dot_dimension_numbers<[1], [0], [0], [1], [0, 0, 1, 1], [], []>} : vector<16x128xf32>, vector<128x128xf32>, vector<16x128xf32> -> vector<16x128xf32>
    %c1_72 = arith.constant 1 : index
    %c1_73 = arith.constant 1 : index
    %c0_74 = arith.constant 0 : index
    %69 = vector.load %arg8[%c1_72, %c1_73, %c0_74] : memref<2x18x128xf32, #tpu.memory_space<vmem>>, vector<1x16x128xf32>
    %70 = vector.shape_cast %69 : vector<1x16x128xf32> to vector<16x128xf32>
    %c1_75 = arith.constant 1 : index
    %c0_76 = arith.constant 0 : index
    %c0_77 = arith.constant 0 : index
    %71 = vector.load %arg4[%c1_75, %c0_76, %c0_77] : memref<3x128x128xf32, #tpu.memory_space<vmem>>, vector<1x128x128xf32>
    %72 = vector.shape_cast %71 : vector<1x128x128xf32> to vector<128x128xf32>
    %cst_78 = arith.constant dense<0.000000e+00> : vector<16x128xf32>
    %73 = tpu.matmul %70, %72, %cst_78 {dimension_numbers = #tpu.dot_dimension_numbers<[1], [0], [0], [1], [0, 0, 1, 1], [], []>} : vector<16x128xf32>, vector<128x128xf32>, vector<16x128xf32> -> vector<16x128xf32>
    %74 = arith.addf %68, %73 : vector<16x128xf32>
    %c0_79 = arith.constant 0 : index
    %c2_80 = arith.constant 2 : index
    %c0_81 = arith.constant 0 : index
    %75 = vector.load %arg8[%c0_79, %c2_80, %c0_81] : memref<2x18x128xf32, #tpu.memory_space<vmem>>, vector<1x16x128xf32>
    %76 = vector.shape_cast %75 : vector<1x16x128xf32> to vector<16x128xf32>
    %c2_82 = arith.constant 2 : index
    %c0_83 = arith.constant 0 : index
    %c0_84 = arith.constant 0 : index
    %77 = vector.load %arg4[%c2_82, %c0_83, %c0_84] : memref<3x128x128xf32, #tpu.memory_space<vmem>>, vector<1x128x128xf32>
    %78 = vector.shape_cast %77 : vector<1x128x128xf32> to vector<128x128xf32>
    %cst_85 = arith.constant dense<0.000000e+00> : vector<16x128xf32>
    %79 = tpu.matmul %76, %78, %cst_85 {dimension_numbers = #tpu.dot_dimension_numbers<[1], [0], [0], [1], [0, 0, 1, 1], [], []>} : vector<16x128xf32>, vector<128x128xf32>, vector<16x128xf32> -> vector<16x128xf32>
    %80 = arith.addf %74, %79 : vector<16x128xf32>
    %81 = vector.broadcast %41 : vector<1x128xf32> to vector<16x128xf32>
    %82 = arith.addf %80, %81 : vector<16x128xf32>
    %c0_86 = arith.constant 0 : index
    %c1_87 = arith.constant 1 : index
    %c0_88 = arith.constant 0 : index
    %c0_89 = arith.constant 0 : index
    %83 = vector.load %arg6[%c0_86, %c1_87, %c0_88, %c0_89] : memref<1x2x16x128xf32, #tpu.memory_space<vmem>>, vector<1x1x16x128xf32>
    %84 = vector.shape_cast %83 : vector<1x1x16x128xf32> to vector<16x128xf32>
    %85 = vector.shape_cast %82 : vector<16x128xf32> to vector<1x1x16x128xf32>
    tpu.vector_store %arg6[%c0_86, %c1_87, %c0_88, %c0_89], %85 {strides = array<i32>} : memref<1x2x16x128xf32, #tpu.memory_space<vmem>>, vector<1x1x16x128xf32>,
    return
  }
  func.func @transform_0(%arg0: i32) -> (i32, i32, i32) {
    %c0_i32 = arith.constant 0 : i32
    %c0_i32_0 = arith.constant 0 : i32
    %c0_i32_1 = arith.constant 0 : i32
    return %arg0, %c0_i32, %c0_i32_0 : i32, i32, i32
  }
  func.func @transform_1(%arg0: i32) -> (i32, i32, i32) {
    %c0_i32 = arith.constant 0 : i32
    %c0_i32_0 = arith.constant 0 : i32
    %c0_i32_1 = arith.constant 0 : i32
    %c0_i32_2 = arith.constant 0 : i32
    return %c0_i32, %c0_i32_0, %c0_i32_1 : i32, i32, i32
  }
  func.func @transform_2(%arg0: i32) -> (i32, i32) {
    %c0_i32 = arith.constant 0 : i32
    %c0_i32_0 = arith.constant 0 : i32
    %c0_i32_1 = arith.constant 0 : i32
    return %c0_i32, %c0_i32_0 : i32, i32
  }
  func.func @transform_3(%arg0: i32) -> (i32, i32, i32) {
    %c0_i32 = arith.constant 0 : i32
    %c0_i32_0 = arith.constant 0 : i32
    %c0_i32_1 = arith.constant 0 : i32
    %c0_i32_2 = arith.constant 0 : i32
    return %c0_i32, %c0_i32_0, %c0_i32_1 : i32, i32, i32
  }
  func.func @transform_4(%arg0: i32) -> (i32, i32) {
    %c0_i32 = arith.constant 0 : i32
    %c0_i32_0 = arith.constant 0 : i32
    %c0_i32_1 = arith.constant 0 : i32
    return %c0_i32, %c0_i32_0 : i32, i32
  }
  func.func @transform_5(%arg0: i32) -> (i32, i32, i32, i32) {
    %c0_i32 = arith.constant 0 : i32
    %c0_i32_0 = arith.constant 0 : i32
    %c0_i32_1 = arith.constant 0 : i32
    %c0_i32_2 = arith.constant 0 : i32
    return %arg0, %c0_i32, %c0_i32_0, %c0_i32_1 : i32, i32, i32, i32
  }
}

</mosaic_0001>

<bundles_post_ra>
// kernel: tile.10
= control target key start
LH: loop header
LB: loop body
LE: loop exit
PB: predicated region body
PF: predicated region fallthrough
CT: control target
= control target key end

     0   :  { %s40_s0 = inlined_call_operand.vmem [shape: f32[4], index: 0, kind: input, shape index: {}]   ;;  %s41_s1 = inlined_call_operand.vmem [shape: f32[32,4], index: 1, kind: output, shape index: {}]  }
   0x1   :  { %v4_v0 = vld [vmem:[%s40_s0] ss:$0 sm:$0xff] }
   0x2   :  { %5 = vst [vmem:[%s41_s1] sm:$0xff] %v4_v0  ;;  %12 = vst [vmem:[%s41_s1 + $0x8] sm:$0xff] %v4_v0 }
   0x3   :  { %13 = vst [vmem:[%s41_s1 + $0x10] sm:$0xff] %v4_v0  ;;  %14 = vst [vmem:[%s41_s1 + $0x18] sm:$0xff] %v4_v0 }

// kernel: tile.11
= control target key start
LH: loop header
LB: loop body
LE: loop exit
PB: predicated region body
PF: predicated region fallthrough
CT: control target
= control target key end

     0   :  { %s259_s10 = smov 124   ;;  %s260_s11 = smov 116   ;;  %vm3_vm0 = vcmask 31744   ;;  %vm9_vm1 = vcmask 1048544   ;;  %vm15_vm2 = vcmask 1015744   ;;  %vm21_vm3 = vcmask 982944   ;;  %s399_s0 = inlined_call_operand.vmem [shape: f32[32,4], index: 0, kind: input, shape index: {}]   ;;  %s400_s1 = inlined_call_operand.vmem [shape: f32[1,128], index: 1, kind: output, shape index: {}]  }
   0x1   :  { %v197_v0 = vld [vmem:[%s399_s0 + $0x1f] sm:$0x1]   ;;  %v199_v1 = vld [vmem:[%s399_s0 + $0x1d] sm:$0x1]   ;;  %v198_v2 = vld [vmem:[%s399_s0 + $0x1e] sm:$0x1]  }
   0x2   :  { %7 = vrot.lane.b32.xlu0 %v197_v0, %s259_s10  ;;  %19 = vrot.lane.b32.xlu1 %v199_v1, %s260_s11  ;;  %v200_v3 = vld [vmem:[%s399_s0 + $0x1c] sm:$0x1]   ;;  %s261_s16 = smov 120   ;;  %s262_s17 = smov 112   ;;  %v201_v4 = vld [vmem:[%s399_s0 + $0x1b] sm:$0x1]  }
   0x3   :  { %v202_v5 = vld [vmem:[%s399_s0 + $0x1a] sm:$0x1]   ;;  %s263_s22 = smov 108   ;;  %s264_s23 = smov 104   ;;  %v203_v6 = vld [vmem:[%s399_s0 + $0x19] sm:$0x1]  }
   0x4   :  { %v204_v7 = vld [vmem:[%s399_s0 + $0x18] sm:$0x1]   ;;  %s265_s28 = smov 100   ;;  %s266_s29 = smov 96   ;;  %v205_v8 = vld [vmem:[%s399_s0 + $0x17] sm:$0x1]  }
   0x5   :  { %v206_v9 = vld [vmem:[%s399_s0 + $0x16] sm:$0x1]   ;;  %v2_v10 = vld [vmem:[%s399_s0] sm:$0x1]   ;;  %s267_s7 = smov 92   ;;  %s268_s8 = smov 88  }
   0x6   :  { %13 = vrot.lane.b32.xlu0 %v198_v2, %s261_s16  ;;  %25 = vrot.lane.b32.xlu1 %v200_v3, %s262_s17  ;;  %4 = vst.msk [vmem:[#allocation0] sm:$0x1] %vm3_vm0, %v2_v10   ;;  %v207_v11 = vld [vmem:[%s399_s0 + $0x15] sm:$0x1]   ;;  %v208_v12 = vld [vmem:[%s399_s0 + $0x14] sm:$0x1]  }
   0x7   :  { %s269_s13 = smov 84   ;;  %s270_s14 = smov 80   ;;  %v209_v13 = vld [vmem:[%s399_s0 + $0x13] sm:$0x1]   ;;  %v210_v14 = vld [vmem:[%s399_s0 + $0x12] sm:$0x1]  }
   0x8   :  { %s271_s19 = smov 76   ;;  %s272_s20 = smov 72   ;;  %v211_v15 = vld [vmem:[%s399_s0 + $0x11] sm:$0x1]   ;;  %v212_v16 = vld [vmem:[%s399_s0 + $0x10] sm:$0x1]  }
   0x9   :  { %s273_s25 = smov 68   ;;  %s274_s26 = smov 64   ;;  %v213_v17 = vld [vmem:[%s399_s0 + $0xf] sm:$0x1]   ;;  %v214_v18 = vld [vmem:[%s399_s0 + $0xe] sm:$0x1]  }
   0xa   :  { %31 = vrot.lane.b32.xlu0 %v201_v4, %s263_s22  ;;  %37 = vrot.lane.b32.xlu1 %v202_v5, %s264_s23  ;;  %s275_s2 = smov 60   ;;  %s276_s3 = smov 56   ;;  %v215_v19 = vld [vmem:[%s399_s0 + $0xd] sm:$0x1]   ;;  %v216_v20 = vld [vmem:[%s399_s0 + $0xc] sm:$0x1]  }
   0xb   :  { %s278_s9 = smov 48   ;;  %v217_v21 = vld [vmem:[%s399_s0 + $0xb] sm:$0x1]   ;;  %v218_v22 = vld [vmem:[%s399_s0 + $0xa] sm:$0x1]   ;;  %s280_s15 = smov 40  }
   0xc   :  { %v219_v23 = vld [vmem:[%s399_s0 + $0x9] sm:$0x1]   ;;  %v220_v24 = vld [vmem:[%s399_s0 + $0x8] sm:$0x1]   ;;  %s282_s21 = smov 32   ;;  %s284_s27 = smov 24  }
   0xd   :  { %v221_v25 = vld [vmem:[%s399_s0 + $0x7] sm:$0x1]   ;;  %v222_v26 = vld [vmem:[%s399_s0 + $0x6] sm:$0x1]   ;;  %v223_v27 = vld [vmem:[%s399_s0 + $0x5] sm:$0x1]  }
   0xe   :  { %43 = vrot.lane.b32.xlu0 %v203_v6, %s265_s28  ;;  %49 = vrot.lane.b32.xlu1 %v204_v7, %s266_s29  ;;  %v224_v28 = vld [vmem:[%s399_s0 + $0x4] sm:$0x1]   ;;  %s286_s4 = smov 16   ;;  %v225_v29 = vld [vmem:[%s399_s0 + $0x3] sm:$0x1]   ;;  %s288_s10 = smov 8  }
   0xf   :  { %v226_v30 = vld [vmem:[%s399_s0 + $0x2] sm:$0x1]   ;;  %v227_v31 = vld [vmem:[%s399_s0 + $0x1] sm:$0x1]   ;;  %s289_s0 = smov 4   ;;  %vm27_vm4 = vcmask 950144  }
  0x10   :  { %vm33_vm5 = vcmask 917344   ;;  %vm39_vm6 = vcmask 884544   ;;  %vm45_vm7 = vcmask 851744   ;;  %vm51_vm8 = vcmask 818944  }
  0x11   :  { %vm57_vm9 = vcmask 786144   ;;  %vm63_vm10 = vcmask 753344   ;;  %vm69_vm11 = vcmask 720544   ;;  %vm75_vm12 = vcmask 687744  }
  0x12   :  { %55 = vrot.lane.b32.xlu0 %v205_v8, %s267_s7  ;;  %61 = vrot.lane.b32.xlu1 %v206_v9, %s268_s8  ;;  %s277_s8 = smov 52   ;;  %vm81_vm13 = vcmask 654944   ;;  %vm87_vm14 = vcmask 622144   ;;  %vm93_vm15 = vcmask 589344   ;;  %vm99_vm0 = vcmask 556544  }
  0x16   :  { %67 = vrot.lane.b32.xlu0 %v207_v11, %s269_s13  ;;  %73 = vrot.lane.b32.xlu1 %v208_v12, %s270_s14  ;;  %s279_s14 = smov 44  }
  0x1a   :  { %79 = vrot.lane.b32.xlu0 %v209_v13, %s271_s19  ;;  %85 = vrot.lane.b32.xlu1 %v210_v14, %s272_s20  ;;  %s281_s20 = smov 36  }
  0x1e   :  { %91 = vrot.lane.b32.xlu0 %v211_v15, %s273_s25  ;;  %97 = vrot.lane.b32.xlu1 %v212_v16, %s274_s26  ;;  %s283_s26 = smov 28  }
  0x22   :  { %103 = vrot.lane.b32.xlu0 %v213_v17, %s275_s2  ;;  %109 = vrot.lane.b32.xlu1 %v214_v18, %s276_s3  ;;  %s285_s3 = smov 20  }
  0x26   :  { %115 = vrot.lane.b32.xlu0 %v215_v19, %s277_s8  ;;  %121 = vrot.lane.b32.xlu1 %v216_v20, %s278_s9  ;;  %s287_s9 = smov 12  }
  0x2a   :  { %127 = vrot.lane.b32.xlu0 %v217_v21, %s279_s14  ;;  %133 = vrot.lane.b32.xlu1 %v218_v22, %s280_s15 }
  0x2e   :  { %139 = vrot.lane.b32.xlu0 %v219_v23, %s281_s20  ;;  %145 = vrot.lane.b32.xlu1 %v220_v24, %s282_s21 }
  0x32   :  { %151 = vrot.lane.b32.xlu0 %v221_v25, %s283_s26  ;;  %157 = vrot.lane.b32.xlu1 %v222_v26, %s284_s27 }
  0x36   :  { %163 = vrot.lane.b32.xlu0 %v223_v27, %s285_s3  ;;  %169 = vrot.lane.b32.xlu1 %v224_v28, %s286_s4 }
  0x3a   :  { %175 = vrot.lane.b32.xlu0 %v225_v29, %s287_s9  ;;  %181 = vrot.lane.b32.xlu1 %v226_v30, %s288_s10 }
  0x3e   :  { %187 = vrot.lane.b32.xlu0 %v227_v31, %s289_s0 }
  0x74   :  { %v8_v32 = vpop.permute.xlu0 %7   ;;  %v20_v33 = vpop.permute.xlu1 %19  }
  0x75   :  { %10 = vst.msk [vmem:[#allocation0] sm:$0x1] %vm9_vm1, %v8_v32   ;;  %vm105_vm1 = vcmask 523744  }
  0x78   :  { %v14_v34 = vpop.permute.xlu0 %13   ;;  %v26_v35 = vpop.permute.xlu1 %25  }
  0x79   :  { %16 = vst.msk [vmem:[#allocation0] sm:$0x1] %vm15_vm2, %v14_v34   ;;  %vm111_vm2 = vcmask 490944  }
  0x7a   :  { %22 = vst.msk [vmem:[#allocation0] sm:$0x1] %vm21_vm3, %v20_v33   ;;  %vm117_vm3 = vcmask 458144  }
  0x7b   :  { %28 = vst.msk [vmem:[#allocation0] sm:$0x1] %vm27_vm4, %v26_v35   ;;  %vm123_vm4 = vcmask 425344  }
  0x7c   :  { %v32_v36 = vpop.permute.xlu0 %31   ;;  %v38_v37 = vpop.permute.xlu1 %37  }
  0x7d   :  { %34 = vst.msk [vmem:[#allocation0] sm:$0x1] %vm33_vm5, %v32_v36   ;;  %vm129_vm5 = vcmask 392544  }
  0x7e   :  { %40 = vst.msk [vmem:[#allocation0] sm:$0x1] %vm39_vm6, %v38_v37   ;;  %vm135_vm6 = vcmask 359744  }
  0x80   :  { %v44_v38 = vpop.permute.xlu0 %43   ;;  %v50_v39 = vpop.permute.xlu1 %49  }
  0x81   :  { %46 = vst.msk [vmem:[#allocation0] sm:$0x1] %vm45_vm7, %v44_v38   ;;  %vm141_vm7 = vcmask 326944  }
  0x82   :  { %52 = vst.msk [vmem:[#allocation0] sm:$0x1] %vm51_vm8, %v50_v39   ;;  %vm147_vm8 = vcmask 294144  }
  0x84   :  { %v56_v40 = vpop.permute.xlu0 %55   ;;  %v62_v41 = vpop.permute.xlu1 %61  }
  0x85   :  { %58 = vst.msk [vmem:[#allocation0] sm:$0x1] %vm57_vm9, %v56_v40   ;;  %vm153_vm9 = vcmask 261344  }
  0x86   :  { %64 = vst.msk [vmem:[#allocation0] sm:$0x1] %vm63_vm10, %v62_v41   ;;  %vm159_vm10 = vcmask 228544  }
  0x88   :  { %v68_v42 = vpop.permute.xlu0 %67   ;;  %v74_v43 = vpop.permute.xlu1 %73  }
  0x89   :  { %70 = vst.msk [vmem:[#allocation0] sm:$0x1] %vm69_vm11, %v68_v42   ;;  %vm165_vm11 = vcmask 195744  }
  0x8a   :  { %76 = vst.msk [vmem:[#allocation0] sm:$0x1] %vm75_vm12, %v74_v43   ;;  %vm171_vm12 = vcmask 162944  }
  0x8c   :  { %v80_v44 = vpop.permute.xlu0 %79   ;;  %v86_v45 = vpop.permute.xlu1 %85  }
  0x8d   :  { %82 = vst.msk [vmem:[#allocation0] sm:$0x1] %vm81_vm13, %v80_v44   ;;  %vm177_vm13 = vcmask 130144  }
  0x8e   :  { %88 = vst.msk [vmem:[#allocation0] sm:$0x1] %vm87_vm14, %v86_v45   ;;  %vm183_vm14 = vcmask 97344  }
  0x90   :  { %v92_v46 = vpop.permute.xlu0 %91   ;;  %v98_v47 = vpop.permute.xlu1 %97  }
  0x91   :  { %94 = vst.msk [vmem:[#allocation0] sm:$0x1] %vm93_vm15, %v92_v46   ;;  %vm189_vm15 = vcmask 64544  }
  0x92   :  { %100 = vst.msk [vmem:[#allocation0] sm:$0x1] %vm99_vm0, %v98_v47  }
  0x94   :  { %v104_v48 = vpop.permute.xlu0 %103   ;;  %v110_v49 = vpop.permute.xlu1 %109  }
  0x95   :  { %106 = vst.msk [vmem:[#allocation0] sm:$0x1] %vm105_vm1, %v104_v48  }
  0x96   :  { %112 = vst.msk [vmem:[#allocation0] sm:$0x1] %vm111_vm2, %v110_v49  }
  0x98   :  { %v116_v50 = vpop.permute.xlu0 %115   ;;  %v122_v51 = vpop.permute.xlu1 %121  }
  0x99   :  { %118 = vst.msk [vmem:[#allocation0] sm:$0x1] %vm117_vm3, %v116_v50  }
  0x9a   :  { %124 = vst.msk [vmem:[#allocation0] sm:$0x1] %vm123_vm4, %v122_v51  }
  0x9c   :  { %v128_v52 = vpop.permute.xlu0 %127   ;;  %v134_v53 = vpop.permute.xlu1 %133  }
  0x9d   :  { %130 = vst.msk [vmem:[#allocation0] sm:$0x1] %vm129_vm5, %v128_v52  }
  0x9e   :  { %136 = vst.msk [vmem:[#allocation0] sm:$0x1] %vm135_vm6, %v134_v53  }
  0xa0   :  { %v140_v54 = vpop.permute.xlu0 %139   ;;  %v146_v55 = vpop.permute.xlu1 %145  }
  0xa1   :  { %142 = vst.msk [vmem:[#allocation0] sm:$0x1] %vm141_vm7, %v140_v54  }
  0xa2   :  { %148 = vst.msk [vmem:[#allocation0] sm:$0x1] %vm147_vm8, %v146_v55  }
  0xa4   :  { %v152_v56 = vpop.permute.xlu0 %151   ;;  %v158_v57 = vpop.permute.xlu1 %157  }
  0xa5   :  { %154 = vst.msk [vmem:[#allocation0] sm:$0x1] %vm153_vm9, %v152_v56  }
  0xa6   :  { %160 = vst.msk [vmem:[#allocation0] sm:$0x1] %vm159_vm10, %v158_v57  }
  0xa8   :  { %v164_v58 = vpop.permute.xlu0 %163   ;;  %v170_v59 = vpop.permute.xlu1 %169  }
  0xa9   :  { %166 = vst.msk [vmem:[#allocation0] sm:$0x1] %vm165_vm11, %v164_v58  }
  0xaa   :  { %172 = vst.msk [vmem:[#allocation0] sm:$0x1] %vm171_vm12, %v170_v59  }
  0xac   :  { %v176_v60 = vpop.permute.xlu0 %175   ;;  %v182_v61 = vpop.permute.xlu1 %181  }
  0xad   :  { %178 = vst.msk [vmem:[#allocation0] sm:$0x1] %vm177_vm13, %v176_v60  }
  0xae   :  { %184 = vst.msk [vmem:[#allocation0] sm:$0x1] %vm183_vm14, %v182_v61  }
  0xb0   :  { %v188_v62 = vpop.permute.xlu0 %187  }
  0xb1   :  { %190 = vst.msk [vmem:[#allocation0] sm:$0x1] %vm189_vm15, %v188_v62  }
  0xb8   :  { %v194_v63 = vld [vmem:[#allocation0] sm:$0x1] }
  0xb9   :  { %196 = vst [vmem:[%s400_s1] sm:$0x1] %v194_v63 }

// kernel: upsample_forward.1
= control target key start
LH: loop header
LB: loop body
LE: loop exit
PB: predicated region body
PF: predicated region fallthrough
CT: control target
= control target key end

     0   :  { %s2216_s18 = smov 0   ;;  %s2522_s0 = inlined_call_operand.vmem [shape: f32[2,16,64], index: 0, kind: input, shape index: {}]   ;;  %s2523_s1 = inlined_call_operand.vmem [shape: bf16[5,64,128], index: 1, kind: input, shape index: {}]   ;;  %s2524_s2 = inlined_call_operand.vmem [shape: f32[1,128], index: 2, kind: input, shape index: {}]   ;;  %s2525_s3 = inlined_call_operand.vmem [shape: f32[3,128,128], index: 3, kind: input, shape index: {}]   ;;  %s2526_s4 = inlined_call_operand.vmem [shape: f32[1,128], index: 4, kind: input, shape index: {}]   ;;  %s2527_s5 = inlined_call_operand.vmem [shape: f32[2,2,16,128], index: 5, kind: output, shape index: {}]  }
   0x1 LB: > { %s1384_s19 = sadd.s32 4294967295, %s2180_s18   ;;  %p1388_p0 = scmp.ge.s32.totalorder %s2180_s18, 1  ;;  %s2180_s18 = sphi %s2216_s18, %s15_s18  }
   0x2   : > { %p187_p1 = scmp.lt.s32.totalorder %s2180_s18, 3 }
   0x4   : > { %p188_p2 = pnand %p1388_p0, %p187_p1 }
   0x5   : > { %p215_p3 = scmp.lt.s32.totalorder (!%p188_p2), %s1384_s19, 1  ;;  %p1393_p4 = scmp.ne.s32.totalorder (!%p188_p2), %s1384_s19, 0 }
   0x6   : > { %191 = sbr.rel (%p188_p2) target bundleno = 581 (0x245), region = 40 }
   0xd   : > { %s216_s20 = scalar_select %p215_p3, %s1384_s19, 1 }
   0xe   : > { %229 = sbr.rel (%p1393_p4) target bundleno = 21 (0x15), region = 44  ;;  %vm230_vm0 = vcmask (!%p1393_p4), 519168   ;;  %vm233_vm1 = vcmask (!%p1393_p4), 516096   ;;  %v2182_v0 = vmov (!%p1393_p4), 0   ;;  %v2183_v1 = vmov (!%p1393_p4), 0.0  }
   0xf   : > { %s1529_s21 = sshll.u32 %s216_s20, 4  ;;  %s1530_s22 = sshll.u32 %s216_s20, 5  ;;  %231 = vst.msk [vmem:[#allocation2] sm:$0xf] (!%p1393_p4), %vm230_vm0, %v2182_v0  ;;  %232 = vst.msk [vmem:[#allocation2 + $0x4] sm:$0xf] (!%p1393_p4), %vm230_vm0, %v2182_v0 }
  0x10   : > { %s2227_s25 = scalar_lea.vmem %s2522_s0, %s1529_s21  ;;  %s2232_s28 = scalar_lea.vmem %s2527_s5, %s1530_s22  ;;  %234 = vst.msk [vmem:[#allocation2 + $0x8] sm:$0x1] (!%p1393_p4), %vm233_vm1, %v2182_v0  ;;  %235 = vst [vmem:[#allocation3] sm:$0xff] (!%p1393_p4), %v2183_v1 }
  0x11   : > { %236 = vst [vmem:[#allocation3 + $0x8] sm:$0xff] (!%p1393_p4), %v2183_v1  ;;  %237 = vst [vmem:[#allocation3 + $0x10] sm:$0x3] (!%p1393_p4), %v2183_v1 }
  0x12   : > { %238 = vst [vmem:[#allocation3 + $0x18] sm:$0xff] (!%p1393_p4), %v2183_v1  ;;  %239 = vst [vmem:[#allocation3 + $0x20] sm:$0xff] (!%p1393_p4), %v2183_v1 }
  0x15 PF: > { %v2148_v2 = vld [vmem:[%s2523_s1 + $0x40] sm:$0xff]   ;;  %v2184_v3 = vmov 0.0   ;;  %v2150_v5 = vld [vmem:[%s2523_s1 + $0x48] sm:$0xff]   ;;  %vm2185_vm2 = vmmov 0   ;;  %v2152_v7 = vld [vmem:[%s2523_s1 + $0x50] sm:$0xff]   ;;  %vm272_vm3 = vcmask 519168  }
  0x16   : > { %1666 = vmatprep.subr.bf16.mxu0 %v2184_v3  ;;  %1678 = vmatprep.subr.bf16.mxu1 %v2184_v3  ;;  %v2149_v4 = vld [vmem:[%s2523_s1] sm:$0xff]   ;;  %v2151_v6 = vld [vmem:[%s2523_s1 + $0x8] sm:$0xff]   ;;  %v2153_v8 = vld [vmem:[%s2523_s1 + $0x10] sm:$0xff]   ;;  %vm249_vm4 = vsmask.f32 256  ;;  %vm280_vm8 = vcmask 516096  }
  0x17   : > { %1667 = vmatpush3.bf16.msra.mxu0 %v2148_v2  ;;  %1674 = vmatprep.mubr.msk.bf16.mxu0 %vm2185_vm2, %v2184_v3  ;;  %v241_v9 = vld [vmem:[%s2227_s25] sm:$0xff]  ;;  %v242_v10 = vld [vmem:[%s2227_s25 + $0x8] sm:$0xff]  ;;  %vm250_vm5 = vsmask.f32 4368  ;;  %v2154_v11 = vld [vmem:[%s2523_s1 + $0x58] sm:$0xff]   ;;  %vm351_vm11 = vcmask 523264  }
  0x18   : > { %1679 = vmatpush3.bf16.msra.mxu1 %v2149_v4  ;;  %1668 = vmatprep.subr.bf16.mxu0 %v2184_v3  ;;  %v1531_v12 = vpack.c.bf16 %v241_v9, %v241_v9  ;;  %v1532_v13 = vpack.c.bf16 %v242_v10, %v242_v10  ;;  %vm273_vm6 = vsmask.f32 7938  ;;  %vm2268_vm7 = vmor %vm249_vm4, %vm250_vm5  ;;  %v2155_v15 = vld [vmem:[%s2523_s1 + $0x18] sm:$0xff]   ;;  %v275_v21 = vld [vmem:[#allocation2] sm:$0xf]  ;;  %vm476_vm13 = vcmask 1046528  }
  0x19   : > { %1680 = vmatprep.subr.bf16.mxu1 %v2184_v3  ;;  %1686 = vmatprep.mubr.msk.bf16.mxu1 %vm2185_vm2, %v2184_v3  ;;  %vm2277_vm9 = vmand %vm272_vm3, %vm273_vm6  ;;  %v282_v24 = vld [vmem:[#allocation2 + $0x8] sm:$0x1]  ;;  %v2162_v32 = vld [vmem:[%s2523_s1 + $0x60] sm:$0xff]   ;;  %vm314_vm12 = vsmask.f32 7424 }
  0x1a   : > { %v253_v16 = vshrl.u32 %v1531_v12, 16  ;;  %v256_v17 = vshll.u32 %v1531_v12, 16  ;;  %v261_v18 = vshrl.u32 %v1532_v13, 16  ;;  %v264_v19 = vshll.u32 %v1532_v13, 16  ;;  %vm281_vm10 = vmand %vm280_vm8, %vm249_vm4  ;;  %v2165_v40 = vld [vmem:[%s2523_s1 + $0x68] sm:$0xff]   ;;  %v2158_v46 = vld [vmem:[%s2523_s1 + $0x80] sm:$0xff]  }
  0x1b   : > { %1669 = vmatpush3.bf16.msra.mxu0 %v2150_v5  ;;  %v2167_v47 = vld [vmem:[%s2523_s1 + $0x70] sm:$0xff]   ;;  %v1460_v51 = vld [vmem:[%s2525_s3 + $0x80] sm:$0xff]  ;;  %v1461_v52 = vld [vmem:[%s2525_s3 + $0x88] sm:$0xff] }
  0x1c   : > { %1681 = vmatpush3.bf16.msra.mxu1 %v2151_v6  ;;  %1670 = vmatprep.subr.bf16.mxu0 %v2184_v3  ;;  %v255_v22 = vrot.slane %v253_v16, 7  ;;  %v263_v23 = vrot.slane %v261_v18, 7  ;;  %v2159_v53 = vld [vmem:[%s2523_s1 + $0x88] sm:$0xff]   ;;  %v2169_v55 = vld [vmem:[%s2523_s1 + $0x78] sm:$0xff]   ;;  %v1936_v58 = vpack.c.bf16 %v1461_v52, %v1460_v51  ;;  %v2160_v59 = vld [vmem:[%s2523_s1 + $0x90] sm:$0xff]  }
  0x1d   : > { %1682 = vmatprep.subr.bf16.mxu1 %v2184_v3  ;;  %v2161_v62 = vld [vmem:[%s2523_s1 + $0x98] sm:$0xff]   ;;  %v2164_v4 = vld [vmem:[%s2523_s1 + $0x20] sm:$0xff]   ;;  %v2166_v6 = vld [vmem:[%s2523_s1 + $0x28] sm:$0xff]  }
  0x1e   : > { %v258_v25 = vor.u32 %v256_v17, %v255_v22  ;;  %v259_v26 = vrot.slane %v255_v22, 4  ;;  %v266_v27 = vor.u32 %v264_v19, %v263_v23  ;;  %v268_v28 = vrot.slane %v263_v23, 4  ;;  %v2173_v12 = vld [vmem:[%s2523_s1 + $0x38] sm:$0xff]   ;;  %v1462_v16 = vld [vmem:[%s2525_s3 + $0x90] sm:$0xff]  ;;  %v1465_v19 = vld [vmem:[%s2525_s3 + $0xa8] sm:$0xff] }
  0x1f   : > { %1671 = vmatpush3.bf16.msra.mxu0 %v2152_v7  ;;  %v1463_v17 = vld [vmem:[%s2525_s3 + $0x98] sm:$0xff] }
  0x20   : > { %1683 = vmatpush3.bf16.msra.mxu1 %v2153_v8  ;;  %1672 = vmatprep.subr.bf16.mxu0 %v2184_v3  ;;  %v267_v29 = vsel %vm2268_vm7, %v259_v26, %v266_v27  ;;  %v276_v30 = vsel %vm2277_vm9, %v258_v25, %v275_v21  ;;  %v283_v31 = vsel %vm281_vm10, %v268_v28, %v282_v24  ;;  %v2168_v8 = vld [vmem:[%s2523_s1 + $0x30] sm:$0xff]   ;;  %v1467_v22 = vld [vmem:[%s2525_s3 + $0xb8] sm:$0xff]  ;;  %v1468_v24 = vld [vmem:[%s2525_s3 + $0xc0] sm:$0xff] }
  0x21   : > { %1684 = vmatprep.subr.bf16.mxu1 %v2184_v3  ;;  %277 = vst [vmem:[#allocation2] sm:$0xf] %v276_v30  ;;  %279 = vst.msk [vmem:[#allocation2 + $0x4] sm:$0xf] %vm272_vm3, %v267_v29  ;;  %v1940_v18 = vpack.c.bf16 %v1463_v17, %v1462_v16  ;;  %v1466_v21 = vld [vmem:[%s2525_s3 + $0xb0] sm:$0xff]  ;;  %v1469_v25 = vld [vmem:[%s2525_s3 + $0xc8] sm:$0xff] }
  0x22   : > { %284 = vst [vmem:[#allocation2 + $0x8] sm:$0x1] %v283_v31  ;;  %v1948_v23 = vpack.c.bf16 %v1467_v22, %v1466_v21  ;;  %v1952_v26 = vpack.c.bf16 %v1469_v25, %v1468_v24  ;;  %v1470_v27 = vld [vmem:[%s2525_s3 + $0xd0] sm:$0xff]  ;;  %v1471_v28 = vld [vmem:[%s2525_s3 + $0xd8] sm:$0xff]  ;;  %v1472_v30 = vld [vmem:[%s2525_s3 + $0xe0] sm:$0xff] }
  0x23   : > { %1673 = vmatpush3.bf16.msra.mxu0 %v2154_v11  ;;  %v1956_v29 = vpack.c.bf16 %v1471_v28, %v1470_v27  ;;  %v1473_v31 = vld [vmem:[%s2525_s3 + $0xe8] sm:$0xff]  ;;  %v763_v16 = vld [vmem:[%s2525_s3 + $0x58] sm:$0xff]  ;;  %v764_v21 = vld [vmem:[%s2525_s3 + $0x60] sm:$0xff] }
  0x24   : > { %1685 = vmatpush3.bf16.msra.mxu1 %v2155_v15  ;;  %1690 = vmatprep.subr.bf16.mxu0 %v2184_v3  ;;  %v765_v22 = vld [vmem:[%s2525_s3 + $0x68] sm:$0xff]  ;;  %v766_v24 = vld [vmem:[%s2525_s3 + $0x70] sm:$0xff]  ;;  %v767_v25 = vld [vmem:[%s2525_s3 + $0x78] sm:$0xff] }
  0x25   : > { %1702 = vmatprep.subr.bf16.mxu1 %v2184_v3  ;;  %v1996_v27 = vpack.c.bf16 %v767_v25, %v766_v24  ;;  %v1476_v28 = vld [vmem:[%s2525_s3 + $0x100] sm:$0xff] }
  0x28   : > { %v286_v33 = vld [vmem:[#allocation2] sm:$0xf]  ;;  %v287_v34 = vld [vmem:[#allocation2 + $0x4] sm:$0xf] }
  0x29   : > { %v1404_v35 = vcombine.low %v286_v33, %v287_v34  ;;  %v2157_v36 = vld [vmem:[#allocation2 + $0x8] ss:$0 sps:$4 sm:$0x11]   ;;  %v561_v43 = vld [vmem:[#allocation2 + $0x4] sm:$0xf]  ;;  %v1474_v33 = vld [vmem:[%s2525_s3 + $0xf0] sm:$0xff] }
  0x2a   : > { %v323_v39 = vshll.u32 %v2157_v36, 16  ;;  %v572_v44 = vld [vmem:[#allocation2] sm:$0xe]  ;;  %v2171_v49 = vld [vmem:[#allocation2 + $0x8] ss:$0 sps:$4 sm:$0x11]  }
  0x2b   : > { %v316_v37 = vshrl.u32 %v1404_v35, 16  ;;  %v318_v38 = vshll.u32 %v1404_v35, 16  ;;  %1687 = vmatmul.mubr.msk.bf16.vlgmr.msra.gmra.mrb[0].mxu1 %vm351_vm11, %v1404_v35  ;;  %v1447_v48 = vcombine.low %v572_v44, %v561_v43  ;;  %v463_v54 = vld [vmem:[#allocation2] sm:$0xe]  ;;  %v591_v57 = vrot.slane %v2171_v49, 1 }
  0x2c   : > { %1703 = vmatpush3.bf16.msra.mxu1 %v2162_v32  ;;  %1710 = vmatprep.mubr.msk.bf16.mxu1 %vm2185_vm2, %v2184_v3  ;;  %v325_v42 = vrot.slane %v323_v39, 1  ;;  %v1424_v60 = vcombine.low %v463_v54, %v287_v34  ;;  %v478_v0 = vrot.slane %v2157_v36, 1  ;;  %v560_v1 = vld [vmem:[#allocation2] sm:$0xf]  ;;  %v672_v11 = vshll.u32 %v2171_v49, 16  ;;  %v1475_v34 = vld [vmem:[%s2525_s3 + $0xf8] sm:$0xff] }
  0x2d   : > { %v320_v41 = vrot.slane %v318_v38, 1  ;;  %1704 = vmatprep.subr.bf16.mxu1 %v2184_v3  ;;  %v590_v56 = vrot.slane %v1447_v48, 1  ;;  %v1454_v5 = vcombine.low %v560_v1, %v561_v43  ;;  %v1960_v32 = vpack.c.bf16 %v1473_v31, %v1472_v30  ;;  %v752_v36 = vld [vmem:[%s2525_s3] sm:$0xff]  ;;  %v1478_v31 = vld [vmem:[%s2525_s3 + $0x110] sm:$0xff] }
  0x2e   : > { %v477_v63 = vrot.slane %v1424_v60, 1  ;;  %v674_v14 = vrot.slane %v672_v11, 1  ;;  %v1964_v35 = vpack.c.bf16 %v1475_v34, %v1474_v33  ;;  %v756_v1 = vld [vmem:[%s2525_s3 + $0x20] sm:$0xff] }
  0x2f   : > { %v321_v45 = vor.u32 %v320_v41, %v316_v37  ;;  %v592_v61 = vsel %vm476_vm13, %v590_v56, %v591_v57  ;;  %v667_v7 = vshll.u32 %v1454_v5, 16  ;;  %v665_v9 = vshrl.u32 %v1454_v5, 16  ;;  %v753_v37 = vld [vmem:[%s2525_s3 + $0x8] sm:$0xff]  ;;  %v758_v5 = vld [vmem:[%s2525_s3 + $0x30] sm:$0xff] }
  0x30   : > { %1705 = vmatpush3.bf16.msra.mxu1 %v2165_v40  ;;  %v479_v2 = vsel %vm476_vm13, %v477_v63, %v478_v0  ;;  %v2403_v38 = vpack.c.bf16 %v753_v37, %v752_v36  ;;  %v1481_v36 = vld [vmem:[%s2525_s3 + $0x128] sm:$0xff] }
  0x31   : > { %v326_v50 = vsel %vm314_vm12, %v321_v45, %v325_v42  ;;  %1706 = vmatprep.subr.bf16.mxu1 %v2184_v3  ;;  %v669_v10 = vrot.slane %v667_v7, 1 }
  0x32   : > { %1675 = vmatmul.mubr.msk.bf16.vlgmr.msra.gmra.mrb[0].mxu0 %vm351_vm11, %v326_v50 }
  0x33   : > { %1691 = vmatpush3.bf16.msra.mxu0 %v2158_v46  ;;  %1698 = vmatprep.mubr.msk.bf16.mxu0 %vm2185_vm2, %v2184_v3  ;;  %v670_v13 = vor.u32 %v669_v10, %v665_v9  ;;  %v761_v9 = vld [vmem:[%s2525_s3 + $0x48] sm:$0xff] }
  0x34   : > { %1692 = vmatprep.subr.bf16.mxu0 %v2184_v3  ;;  %1707 = vmatpush3.bf16.msra.mxu1 %v2167_v47 }
  0x35   : > { %1708 = vmatprep.subr.bf16.mxu1 %v2184_v3  ;;  %v675_v15 = vsel %vm314_vm12, %v670_v13, %v674_v14 }
  0x37   : > { %1693 = vmatpush3.bf16.msra.mxu0 %v2159_v53  ;;  %v1430_v53 = vld [vmem:[%s2524_s2] ss:$0 sm:$0xff] }
  0x38   : > { %1694 = vmatprep.subr.bf16.mxu0 %v2184_v3  ;;  %1709 = vmatpush3.bf16.msra.mxu1 %v2169_v55 }
  0x39   : > { %1937 = vmatprep.subr.bf16.mxu1 %v1936_v58 }
  0x3b   : > { %1695 = vmatpush3.bf16.msra.mxu0 %v2160_v59  ;;  %1711 = vmatmul.mubr.msk.bf16.vlgmr.msra.gmra.mrb[4].mxu1 %vm351_vm11, %v592_v61  ;;  %v755_v59 = vld [vmem:[%s2525_s3 + $0x18] sm:$0xff] }
  0x3c   : > { %1696 = vmatprep.subr.bf16.mxu0 %v2184_v3  ;;  %1939 = vmatpush3.bf16.msra.mxu1 %v1936_v58 }
  0x3d   : > { %1941 = vmatprep.subr.bf16.mxu1 %v1940_v18 }
  0x3f   : > { %1697 = vmatpush3.bf16.msra.mxu0 %v2161_v62 }
  0x40   : > { %1714 = vmatprep.subr.bf16.mxu0 %v2184_v3  ;;  %1943 = vmatpush3.bf16.msra.mxu1 %v1940_v18 }
  0x42   : > { %1699 = vmatmul.mubr.msk.bf16.vlgmr.msra.gmra.mrb[4].mxu0 %vm351_vm11, %v479_v2  ;;  %v757_v2 = vld [vmem:[%s2525_s3 + $0x28] sm:$0xff] }
  0x43   : > { %1715 = vmatpush3.bf16.msra.mxu0 %v2164_v4  ;;  %1722 = vmatprep.mubr.msk.bf16.mxu0 %vm2185_vm2, %v2184_v3  ;;  %v1976_v4 = vpack.c.bf16 %v757_v2, %v756_v1 }
  0x44   : > { %1716 = vmatprep.subr.bf16.mxu0 %v2184_v3 }
  0x47   : > { %1717 = vmatpush3.bf16.msra.mxu0 %v2166_v6  ;;  %v759_v6 = vld [vmem:[%s2525_s3 + $0x38] sm:$0xff] }
  0x48   : > { %1718 = vmatprep.subr.bf16.mxu0 %v2184_v3  ;;  %v1980_v7 = vpack.c.bf16 %v759_v6, %v758_v5 }
  0x4b   : > { %1719 = vmatpush3.bf16.msra.mxu0 %v2168_v8  ;;  %v760_v8 = vld [vmem:[%s2525_s3 + $0x40] sm:$0xff] }
  0x4c   : > { %1720 = vmatprep.subr.bf16.mxu0 %v2184_v3  ;;  %v1464_v3 = vld [vmem:[%s2525_s3 + $0xa0] sm:$0xff]  ;;  %v1984_v13 = vpack.c.bf16 %v761_v9, %v760_v8 }
  0x4d   : > { %v1944_v20 = vpack.c.bf16 %v1465_v19, %v1464_v3 }
  0x4f   : > { %1721 = vmatpush3.bf16.msra.mxu0 %v2173_v12  ;;  %1945 = vmatprep.subr.bf16.mxu1 %v1944_v20 }
  0x50   : > { %2033 = vmatprep.subr.bf16.mxu0 %v1936_v58  ;;  %1947 = vmatpush3.bf16.msra.mxu1 %v1944_v20 }
  0x51   : > { %1949 = vmatprep.subr.bf16.mxu1 %v1948_v23 }
  0x52   : > { %1723 = vmatmul.mubr.msk.bf16.vlgmr.msra.gmra.mrb[8].mxu0 %vm351_vm11, %v675_v15  ;;  %v762_v15 = vld [vmem:[%s2525_s3 + $0x50] sm:$0xff] }
  0x53   : > { %2035 = vmatpush3.bf16.msra.mxu0 %v1936_v58  ;;  %v754_v58 = vld [vmem:[%s2525_s3 + $0x10] sm:$0xff] }
  0x54   : > { %2037 = vmatprep.subr.bf16.mxu0 %v1940_v18  ;;  %1951 = vmatpush3.bf16.msra.mxu1 %v1948_v23  ;;  %v1972_v0 = vpack.c.bf16 %v755_v59, %v754_v58 }
  0x55   : > { %1953 = vmatprep.subr.bf16.mxu1 %v1952_v26 }
  0x57   : > { %2039 = vmatpush3.bf16.msra.mxu0 %v1940_v18 }
  0x58   : > { %2041 = vmatprep.subr.bf16.mxu0 %v1944_v20  ;;  %1955 = vmatpush3.bf16.msra.mxu1 %v1952_v26 }
  0x59   : > { %1957 = vmatprep.subr.bf16.mxu1 %v1956_v29 }
  0x5b   : > { %2043 = vmatpush3.bf16.msra.mxu0 %v1944_v20  ;;  %v1988_v20 = vpack.c.bf16 %v763_v16, %v762_v15 }
  0x5c   : > { %2045 = vmatprep.subr.bf16.mxu0 %v1948_v23  ;;  %1959 = vmatpush3.bf16.msra.mxu1 %v1956_v29 }
  0x5d   : > { %1961 = vmatprep.subr.bf16.mxu1 %v1960_v32 }
  0x5f   : > { %2047 = vmatpush3.bf16.msra.mxu0 %v1948_v23  ;;  %v1992_v23 = vpack.c.bf16 %v765_v22, %v764_v21 }
  0x60   : > { %2049 = vmatprep.subr.bf16.mxu0 %v1952_v26  ;;  %1963 = vmatpush3.bf16.msra.mxu1 %v1960_v32 }
  0x61   : > { %1965 = vmatprep.subr.bf16.mxu1 %v1964_v35 }
  0x63   : > { %2051 = vmatpush3.bf16.msra.mxu0 %v1952_v26 }
  0x64   : > { %2053 = vmatprep.subr.bf16.mxu0 %v1956_v29  ;;  %1967 = vmatpush3.bf16.msra.mxu1 %v1964_v35 }
  0x65   : > { %1969 = vmatprep.subr.bf16.mxu1 %v2403_v38 }
  0x67   : > { %2055 = vmatpush3.bf16.msra.mxu0 %v1956_v29  ;;  %v1477_v29 = vld [vmem:[%s2525_s3 + $0x108] sm:$0xff] }
  0x68   : > { %2057 = vmatprep.subr.bf16.mxu0 %v1960_v32  ;;  %v2000_v30 = vpack.c.bf16 %v1477_v29, %v1476_v28 }
  0x6b   : > { %2059 = vmatpush3.bf16.msra.mxu0 %v1960_v32  ;;  %v1479_v32 = vld [vmem:[%s2525_s3 + $0x118] sm:$0xff] }
  0x6c   : > { %2061 = vmatprep.subr.bf16.mxu0 %v1964_v35  ;;  %v2004_v33 = vpack.c.bf16 %v1479_v32, %v1478_v31 }
  0x6f   : > { %2063 = vmatpush3.bf16.msra.mxu0 %v1964_v35  ;;  %v1480_v35 = vld [vmem:[%s2525_s3 + $0x120] sm:$0xff] }
  0x70   : > { %2065 = vmatprep.subr.bf16.mxu0 %v2403_v38  ;;  %v2008_v37 = vpack.c.bf16 %v1481_v36, %v1480_v35 }
  0xfe   : > { %v456_v39 = vpop.f32.mrb[0].mxu1 }
  0xff   : > { %v1688_v40 = vpop.f32.mrb[1].mxu1 }
 0x100   : > { %v459_v41 = vpop.f32.mrb[2].mxu1 }
 0x101   : > { %v1689_v42 = vpop.f32.mrb[3].mxu1 }
 0x102   : > { %v1485_v42 = vld [vmem:[%s2525_s3 + $0x148] sm:$0xff] }
 0x105   : > { %v389_v43 = vpop.f32.mrb[0].mxu0 }
 0x106   : > { %v457_v44 = vadd.f32 %v456_v39, %v389_v43  ;;  %v1676_v45 = vpop.f32.mrb[1].mxu0  ;;  %v1483_v39 = vld [vmem:[%s2525_s3 + $0x138] sm:$0xff] }
 0x107   : > { %v392_v46 = vpop.f32.mrb[2].mxu0  ;;  %v1487_v45 = vld [vmem:[%s2525_s3 + $0x158] sm:$0xff] }
 0x108   : > { %v460_v47 = vadd.f32 %v459_v41, %v392_v46  ;;  %v1677_v48 = vpop.f32.mrb[3].mxu0  ;;  %v1484_v41 = vld [vmem:[%s2525_s3 + $0x140] sm:$0xff] }
 0x109   : > { %v2016_v43 = vpack.c.bf16 %v1485_v42, %v1484_v41  ;;  %v1489_v48 = vld [vmem:[%s2525_s3 + $0x168] sm:$0xff] }
 0x10e   : > { %v654_v49 = vpop.f32.mrb[4].mxu1 }
 0x10f   : > { %v1712_v50 = vpop.f32.mrb[5].mxu1 }
 0x110   : > { %v657_v51 = vpop.f32.mrb[6].mxu1 }
 0x111   : > { %v1713_v52 = vpop.f32.mrb[7].mxu1 }
 0x112   : > { %v1491_v52 = vld [vmem:[%s2525_s3 + $0x178] sm:$0xff] }
 0x115   : > { %v541_v54 = vpop.f32.mrb[4].mxu0 }
 0x116   : > { %v548_v55 = vadd.f32 %v541_v54, %v457_v44  ;;  %v1700_v56 = vpop.f32.mrb[5].mxu0  ;;  %v1486_v44 = vld [vmem:[%s2525_s3 + $0x150] sm:$0xff] }
 0x117   : > { %v544_v57 = vpop.f32.mrb[6].mxu0  ;;  %v2020_v46 = vpack.c.bf16 %v1487_v45, %v1486_v44 }
 0x118   : > { %v556_v60 = vadd.f32 %v1430_v53, %v548_v55  ;;  %v549_v61 = vadd.f32 %v544_v57, %v460_v47  ;;  %v1701_v62 = vpop.f32.mrb[7].mxu0  ;;  %v1488_v47 = vld [vmem:[%s2525_s3 + $0x160] sm:$0xff] }
 0x119   : > { %v2024_v50 = vpack.c.bf16 %v1489_v48, %v1488_v47  ;;  %v1492_v55 = vld [vmem:[%s2526_s4] ss:$0 sm:$0xff] }
 0x11a   : > { %558 = vst [vmem:[#allocation3 + $0x1] sm:$0xff] %v556_v60  ;;  %v2416_v63 = vadd.f32 %v1430_v53, %v549_v61  ;;  %1758 = vmatprep.mubr.f32.mxu1 %v556_v60 }
 0x11c   : > { %559 = vst [vmem:[#allocation3 + $0x9] sm:$0xff] %v2416_v63  ;;  %1759 = vmatmul.mubr.f32.vlgmr.msra.gmra.mrb[8].mxu1 %v2416_v63 }
 0x11d   : > { %1971 = vmatpush3.bf16.msra.mxu1 %v2403_v38 }
 0x11e   : > { %1973 = vmatprep.subr.bf16.mxu1 %v1972_v0 }
 0x121   : > { %1975 = vmatpush3.bf16.msra.mxu1 %v1972_v0 }
 0x122   : > { %1977 = vmatprep.subr.bf16.mxu1 %v1976_v4 }
 0x123   : > { %v1230_v54 = vld [vmem:[#allocation3 + $0xa] sm:$0xff] }
 0x125   : > { %v737_v10 = vpop.f32.mrb[8].mxu0  ;;  %1979 = vmatpush3.bf16.msra.mxu1 %v1976_v4 }
 0x126   : > { %v738_v11 = vadd.f32 %v737_v10, %v654_v49  ;;  %v1724_v12 = vpop.f32.mrb[9].mxu0  ;;  %1981 = vmatprep.subr.bf16.mxu1 %v1980_v7  ;;  %v1229_v49 = vld [vmem:[#allocation3 + $0x2] sm:$0xff] }
 0x127   : > { %v740_v14 = vpop.f32.mrb[10].mxu0 }
 0x128   : > { %v744_v17 = vadd.f32 %v1430_v53, %v738_v11  ;;  %v741_v18 = vadd.f32 %v740_v14, %v657_v51  ;;  %v1725_v3 = vpop.f32.mrb[11].mxu0  ;;  %v1490_v51 = vld [vmem:[%s2525_s3 + $0x170] sm:$0xff] }
 0x129   : > { %1983 = vmatpush3.bf16.msra.mxu1 %v1980_v7 }
 0x12a   : > { %747 = vst [vmem:[#allocation3 + $0x19] sm:$0xff] %v744_v17  ;;  %v2445_v19 = vadd.f32 %v1430_v53, %v741_v18  ;;  %1863 = vmatprep.mubr.f32.mxu0 %v744_v17  ;;  %1985 = vmatprep.subr.bf16.mxu1 %v1984_v13  ;;  %v2028_v53 = vpack.c.bf16 %v1491_v52, %v1490_v51 }
 0x12c   : > { %748 = vst [vmem:[#allocation3 + $0x21] sm:$0xff] %v2445_v19  ;;  %1864 = vmatmul.mubr.f32.vlgmr.msra.gmra.mrb[12].mxu0 %v2445_v19 }
 0x12d   : > { %1987 = vmatpush3.bf16.msra.mxu1 %v1984_v13  ;;  %2067 = vmatpush3.bf16.msra.mxu0 %v2403_v38  ;;  %v1482_v38 = vld [vmem:[%s2525_s3 + $0x130] sm:$0xff] }
 0x12e   : > { %1898 = vmatprep.mubr.f32.mxu0 %v556_v60  ;;  %1989 = vmatprep.subr.bf16.mxu1 %v1988_v20  ;;  %v2012_v40 = vpack.c.bf16 %v1483_v39, %v1482_v38 }
 0x12f   : > { %2069 = vmatprep.subr.bf16.mxu0 %v1972_v0 }
 0x131   : > { %v750_v26 = vld [vmem:[#allocation3 + $0x18] sm:$0xff]  ;;  %1991 = vmatpush3.bf16.msra.mxu1 %v1988_v20  ;;  %2071 = vmatpush3.bf16.msra.mxu0 %v1972_v0 }
 0x132   : > { %1793 = vmatprep.mubr.f32.mxu1 %v750_v26  ;;  %1993 = vmatprep.subr.bf16.mxu1 %v1992_v23 }
 0x133   : > { %2073 = vmatprep.subr.bf16.mxu0 %v1976_v4  ;;  %v751_v34 = vld [vmem:[#allocation3 + $0x20] sm:$0xff] }
 0x135   : > { %1995 = vmatpush3.bf16.msra.mxu1 %v1992_v23  ;;  %2075 = vmatpush3.bf16.msra.mxu0 %v1976_v4 }
 0x136   : > { %1997 = vmatprep.subr.bf16.mxu1 %v1996_v27  ;;  %2077 = vmatprep.subr.bf16.mxu0 %v1980_v7 }
 0x139   : > { %1999 = vmatpush3.bf16.msra.mxu1 %v1996_v27  ;;  %2079 = vmatpush3.bf16.msra.mxu0 %v1980_v7 }
 0x13a   : > { %2001 = vmatprep.subr.bf16.mxu1 %v2000_v30  ;;  %2081 = vmatprep.subr.bf16.mxu0 %v1984_v13 }
 0x13c   : > { %1794 = vmatmul.mubr.f32.vlgmr.msra.gmra.mrb[8].mxu1 %v751_v34 }
 0x13d   : > { %2003 = vmatpush3.bf16.msra.mxu1 %v2000_v30  ;;  %1828 = vmatprep.mubr.f32.mxu1 %v744_v17 }
 0x13e   : > { %2083 = vmatpush3.bf16.msra.mxu0 %v1984_v13  ;;  %2005 = vmatprep.subr.bf16.mxu1 %v2004_v33 }
 0x13f   : > { %2085 = vmatprep.subr.bf16.mxu0 %v1988_v20 }
 0x141   : > { %2007 = vmatpush3.bf16.msra.mxu1 %v2004_v33 }
 0x142   : > { %2087 = vmatpush3.bf16.msra.mxu0 %v1988_v20  ;;  %2009 = vmatprep.subr.bf16.mxu1 %v2008_v37 }
 0x143   : > { %2089 = vmatprep.subr.bf16.mxu0 %v1992_v23 }
 0x145   : > { %2011 = vmatpush3.bf16.msra.mxu1 %v2008_v37 }
 0x146   : > { %2091 = vmatpush3.bf16.msra.mxu0 %v1992_v23  ;;  %2013 = vmatprep.subr.bf16.mxu1 %v2012_v40 }
 0x147   : > { %2093 = vmatprep.subr.bf16.mxu0 %v1996_v27 }
 0x149   : > { %2015 = vmatpush3.bf16.msra.mxu1 %v2012_v40 }
 0x14a   : > { %2095 = vmatpush3.bf16.msra.mxu0 %v1996_v27  ;;  %2017 = vmatprep.subr.bf16.mxu1 %v2016_v43 }
 0x14b   : > { %2097 = vmatprep.subr.bf16.mxu0 %v2000_v30 }
 0x14d   : > { %1899 = vmatmul.mubr.f32.vlgmr.msra.gmra.mrb[12].mxu0 %v2416_v63  ;;  %2019 = vmatpush3.bf16.msra.mxu1 %v2016_v43 }
 0x14e   : > { %2099 = vmatpush3.bf16.msra.mxu0 %v2000_v30  ;;  %1933 = vmatprep.mubr.f32.mxu0 %v1229_v49 }
 0x14f   : > { %2021 = vmatprep.subr.bf16.mxu1 %v2020_v46  ;;  %2101 = vmatprep.subr.bf16.mxu0 %v2004_v33 }
 0x151   : > { %2023 = vmatpush3.bf16.msra.mxu1 %v2020_v46 }
 0x152   : > { %2103 = vmatpush3.bf16.msra.mxu0 %v2004_v33  ;;  %2025 = vmatprep.subr.bf16.mxu1 %v2024_v50 }
 0x153   : > { %2105 = vmatprep.subr.bf16.mxu0 %v2008_v37 }
 0x155   : > { %2027 = vmatpush3.bf16.msra.mxu1 %v2024_v50 }
 0x156   : > { %2107 = vmatpush3.bf16.msra.mxu0 %v2008_v37  ;;  %2029 = vmatprep.subr.bf16.mxu1 %v2028_v53 }
 0x157   : > { %2109 = vmatprep.subr.bf16.mxu0 %v2012_v40 }
 0x159   : > { %2031 = vmatpush3.bf16.msra.mxu1 %v2028_v53 }
 0x15a   : > { %2111 = vmatpush3.bf16.msra.mxu0 %v2012_v40 }
 0x15b   : > { %2113 = vmatprep.subr.bf16.mxu0 %v2016_v43 }
 0x15c   : > { %1829 = vmatmul.mubr.f32.vlgmr.msra.gmra.mrb[8].mxu1 %v2445_v19 }
 0x15e   : > { %2115 = vmatpush3.bf16.msra.mxu0 %v2016_v43 }
 0x15f   : > { %2117 = vmatprep.subr.bf16.mxu0 %v2020_v46 }
 0x162   : > { %2119 = vmatpush3.bf16.msra.mxu0 %v2020_v46 }
 0x163   : > { %2121 = vmatprep.subr.bf16.mxu0 %v2024_v50 }
 0x166   : > { %2123 = vmatpush3.bf16.msra.mxu0 %v2024_v50 }
 0x167   : > { %2125 = vmatprep.subr.bf16.mxu0 %v2028_v53 }
 0x16a   : > { %2127 = vmatpush3.bf16.msra.mxu0 %v2028_v53 }
 0x16d   : > { %1934 = vmatmul.mubr.f32.vlgmr.msra.gmra.mrb[12].mxu0 %v1230_v54 }
 0x22f   : > { %v1830_v56 = vpop.f32.mrb[8].mxu1 }
 0x230   : > { %v1040_v57 = vadd.f32 %v1830_v56, %v1492_v55  ;;  %v1022_v58 = vpop.f32.mrb[9].mxu1 }
 0x231   : > { %v1039_v59 = vadd.f32 %v1492_v55, %v1022_v58 }
 0x232   : > { %1042 = vst [vmem:[%s2232_s28 + $0x8] sm:$0xff] %v1040_v57 }
 0x233   : > { %1041 = vst [vmem:[%s2232_s28] sm:$0xff] %v1039_v59 }
 0x240   : > { %v1935_v60 = vpop.f32.mrb[12].mxu0 }
 0x241   : > { %v1325_v61 = vadd.f32 %v1935_v60, %v1492_v55  ;;  %v1313_v62 = vpop.f32.mrb[13].mxu0 }
 0x242   : > { %v1324_v63 = vadd.f32 %v1492_v55, %v1313_v62 }
 0x243   : > { %1526 = vst [vmem:[%s2232_s28 + $0x18] sm:$0xff] %v1325_v61 }
 0x244   : > { %1525 = vst [vmem:[%s2232_s28 + $0x10] sm:$0xff] %v1324_v63 }
 0x245 PF: > { %s15_s18 = sadd.s32 1, %s2180_s18  }
 0x246   : > { %p12_p5 = scmp.ge.s32.totalorder %s15_s18, 4  }
 0x248   :  { %14 = sbr.rel (!%p12_p5) target bundleno = 1 (0x1), region = 82 }

</bundles_post_ra>
